<compile_context>
chip_gen: v7x
topology: tpu7x:2x2x1
jax: 0.10.0
libtpu: 0.0.40
codegen_flags: <defaults>
</compile_context>

<pallas_src>
import functools

import numpy as np
import jax
import jax.numpy as jnp
from jax.experimental import pallas as pl
from jax.experimental.pallas import tpu as pltpu

# --- module hyper-parameters (deterministic, from __init__) -----------------
SENSITIVE_CLASSES = (0.0, 1.0)
ALPHA = 1.0
P_NORM = 2
N_CLASS = len(SENSITIVE_CLASSES)
N_CONSTRAINTS = 2 * N_CLASS          # 4
DIM_CONDITION = N_CLASS + 1          # 3
LANES = 128


def build_M():
    """Deterministic constraint matrix, exactly as in DemographicParityLoss.__init__."""
    M = np.zeros((N_CONSTRAINTS, DIM_CONDITION), np.float32)
    for i in range(N_CONSTRAINTS):
        j = i % 2
        if j == 0:
            M[i, j] = 1.0
            M[i, -1] = -1.0
        else:
            M[i, j - 1] = -1.0
            M[i, -1] = 1.0
    return M


_M_CONST = build_M()   # baked into the finalize branch as python constants


# --- Pallas kernel -----------------------------------------------------------
def _make_kernel(n, tm, grid):
    """n / tile / grid / M are compile-time constants (no scalar prefetch)."""
    last = grid - 1
    # Number of valid elements in the last tile.  Everything at an in-tile
    # flat index >= rem is either the zero pad (to reach a 128 multiple) or a
    # Pallas block-overrun row whose contents are unspecified -> masked.
    rem = n - last * tm * LANES
    scale = float(ALPHA) / float(N_CONSTRAINTS)

    def kernel(out_ref, sens_ref, res_ref, s_sig, s_sig_sens, s_sens):
        k = pl.program_id(0)

        @pl.when(k == 0)
        def _init():
            s_sig[...] = jnp.zeros_like(s_sig)
            s_sig_sens[...] = jnp.zeros_like(s_sig_sens)
            s_sens[...] = jnp.zeros_like(s_sens)

        logits = out_ref[...].astype(jnp.float32)     # (tm, 128)
        sens = sens_ref[...].astype(jnp.float32)
        # sigmoid: exp + approx reciprocal both run on the EUP slot, keeping
        # the steady-state loop off the multi-op VALU divide sequence.
        sig = pl.reciprocal(1.0 + jnp.exp(-logits), approx=True)

        @pl.when(k != last)
        def _steady():
            # Hot path: no masking, sublane reductions into (1,128) lane partials.
            s_sig[...] += jnp.sum(sig, axis=0, keepdims=True)
            s_sig_sens[...] += jnp.sum(sig * sens, axis=0, keepdims=True)
            s_sens[...] += jnp.sum(sens, axis=0, keepdims=True)

        @pl.when(k == last)
        def _last_tile_and_finalize():
            # Mask only in the last tile (pad + possible block overrun).
            row = jax.lax.broadcasted_iota(jnp.int32, (tm, LANES), 0)
            lane = jax.lax.broadcasted_iota(jnp.int32, (tm, LANES), 1)
            valid = (row * LANES + lane) < rem
            sig_v = jnp.where(valid, sig, 0.0)
            sens_v = jnp.where(valid, sens, 0.0)

            s_all = jnp.sum(s_sig[...]) + jnp.sum(sig_v)
            s1 = jnp.sum(s_sig_sens[...]) + jnp.sum(sig_v * sens_v)
            cnt1 = jnp.sum(s_sens[...]) + jnp.sum(sens_v)

            n_f = jnp.float32(n)
            mu0 = (s_all - s1) / (n_f - cnt1)   # NaN if class 0 empty (== torch)
            mu1 = s1 / cnt1                     # NaN if class 1 empty (== torch)
            mu_all = s_all / n_f
            mu = (mu0, mu1, mu_all)

            # gap = relu(M @ mu); loss = alpha * mean(gap^2)   (c == 0, p_norm == 2)
            acc = jnp.float32(0.0)
            for i in range(N_CONSTRAINTS):      # tiny 4x3 matvec, M baked in
                g = jnp.float32(0.0)
                for j in range(DIM_CONDITION):
                    g = g + jnp.float32(float(_M_CONST[i, j])) * mu[j]
                g = jnp.maximum(g, jnp.float32(0.0))
                acc = acc + g * g
            res_ref[0, 0] = jnp.float32(scale) * acc

    return kernel


# --- wrapper -----------------------------------------------------------------
@functools.partial(jax.jit, static_argnames=("tm_max",))
def demographic_parity_loss(X, out, sensitive, tm_max=4096):
    # X is accepted for API parity with the PyTorch forward but unused by mu_f.
    del X
    n = out.size                                  # static under jit
    out_flat = out.reshape(-1)
    if out_flat.dtype not in (jnp.float32, jnp.bfloat16):
        out_flat = out_flat.astype(jnp.float32)
    # Keep `sensitive` in its incoming float dtype (no wrapper-side cast copy);
    # it is cast to f32 right after load inside the kernel.
    sens_flat = sensitive.reshape(out.shape).reshape(-1)
    if sens_flat.dtype not in (jnp.float32, jnp.bfloat16):
        sens_flat = sens_flat.astype(jnp.float32)

    # Minimal pad to a 128 multiple (skipped -- and the reshape is free --
    # when n % 128 == 0).  No padding to a tile multiple: the last grid block
    # may overrun the rows and is masked inside the kernel.
    lane_pad = (-n) % LANES
    if lane_pad:
        out_flat = jnp.pad(out_flat, (0, lane_pad))
        sens_flat = jnp.pad(sens_flat, (0, lane_pad))
    rows = (n + lane_pad) // LANES
    out2d = out_flat.reshape(rows, LANES)
    sens2d = sens_flat.reshape(rows, LANES)

    # Tile selection: full-array block when it fits, else tm_max rows
    # (multiple of 16 keeps bf16 inputs legal).  tm=4096 -> 2 MiB per f32
    # block, 8 MiB double-buffered -> within the default scoped VMEM on
    # v5e / v6e / v7x.
    tm_max = max(16, (int(tm_max) // 16) * 16)
    tm = rows if rows <= tm_max else tm_max
    grid = pl.cdiv(rows, tm)

    res = pl.pallas_call(
        _make_kernel(n, tm, grid),
        out_shape=jax.ShapeDtypeStruct((1, 1), jnp.float32),
        grid=(grid,),
        in_specs=[
            pl.BlockSpec((tm, LANES), lambda k: (k, 0)),   # logits tiles
            pl.BlockSpec((tm, LANES), lambda k: (k, 0)),   # sensitive tiles
        ],
        out_specs=pl.BlockSpec(memory_space=pltpu.MemorySpace.SMEM),
        scratch_shapes=[pltpu.VMEM((1, LANES), jnp.float32)] * 3,
        compiler_params=pltpu.CompilerParams(
            dimension_semantics=("arbitrary",),            # reduction axis
        ),
    )(out2d, sens2d)
    return res[0, 0]


# --- pure reference (float64, for correctness check) -------------------------
def reference_loss(out, sensitive):
    out = np.asarray(out, np.float64).reshape(-1)
    s = np.asarray(sensitive, np.float64).reshape(-1)
    sig = 1.0 / (1.0 + np.exp(-out))
    mus = [sig[s == v].mean() for v in SENSITIVE_CLASSES] + [sig.mean()]
    mu = np.asarray(mus, np.float64)
    M = np.asarray(_M_CONST, np.float64)
    gap = np.maximum(M @ mu, 0.0)
    return ALPHA * np.mean(gap ** 2)


if __name__ == "__main__":
    key = jax.random.PRNGKey(0)
    k1, k2, k3 = jax.random.split(key, 3)

    # Small batch, not a multiple of 128 -> exercises the last-tile masking path.
    N, D = 300, 16
    X = jax.random.normal(k1, (N, D), jnp.float32)            # unused features
    out = jax.random.normal(k2, (N,), jnp.float32)            # model logits
    sensitive = jax.random.bernoulli(k3, 0.5, (N,)).astype(jnp.float32)

    loss = jax.block_until_ready(demographic_parity_loss(X, out, sensitive))
    ref = reference_loss(np.asarray(out), np.asarray(sensitive))
    # approx-reciprocal sigmoid + f32 accumulation vs a float64 exact reference
    assert np.allclose(np.asarray(loss), ref, rtol=2e-2, atol=1e-6), (loss, ref)

    # Multi-tile reduction grid: small tile forces grid > 1 and a partial last
    # block (row overrun) on top of the lane-pad tail.
    N2 = 2500
    X2 = jnp.zeros((N2, D), jnp.float32)
    out2 = jax.random.normal(k2, (N2,), jnp.float32)
    sens2 = jax.random.bernoulli(k3, 0.5, (N2,)).astype(jnp.float32)
    loss2 = jax.block_until_ready(
        demographic_parity_loss(X2, out2, sens2, tm_max=16))
    ref2 = reference_loss(np.asarray(out2), np.asarray(sens2))
    assert np.allclose(np.asarray(loss2), ref2, rtol=2e-2, atol=1e-6), (loss2, ref2)

    print("KERNEL_OK")
</pallas_src>

<mosaic_0001>
module attributes {stable_mosaic.version = 11 : i64} {
  func.func @kernel(%arg0: i32, %arg1: memref<3x128xf32, #tpu.memory_space<vmem>>, %arg2: memref<3x128xf32, #tpu.memory_space<vmem>>, %arg3: memref<1x1xf32, #tpu.memory_space<smem>>, %arg4: memref<1x128xf32, #tpu.memory_space<vmem>>, %arg5: memref<1x128xf32, #tpu.memory_space<vmem>>, %arg6: memref<1x128xf32, #tpu.memory_space<vmem>>) attributes {dimension_semantics = [#tpu.dimension_semantics<arbitrary>], iteration_bounds = array<i64: 1>, scalar_prefetch = 0 : i64, scratch_operands = 3 : i64, tpu.core_type = #tpu.core_type<tc>, window_params = [{transform_indices = @transform_0, window_bounds = array<i64: 3, 128>}, {transform_indices = @transform_1, window_bounds = array<i64: 3, 128>}, {transform_indices = @transform_2, window_bounds = array<i64: 1, 1>}]} {
    %c0_i32 = arith.constant 0 : i32
    %0 = arith.cmpi eq, %arg0, %c0_i32 : i32
    %1 = arith.extui %0 : i1 to i32
    %c0_i32_0 = arith.constant 0 : i32
    %2 = arith.cmpi ne, %1, %c0_i32_0 : i32
    scf.if %2 {
      %cst_9 = arith.constant 0.000000e+00 : f32
      %17 = vector.broadcast %cst_9 : f32 to vector<1x128xf32>
      %c0_10 = arith.constant 0 : index
      %c0_11 = arith.constant 0 : index
      %18 = vector.load %arg4[%c0_10, %c0_11] : memref<1x128xf32, #tpu.memory_space<vmem>>, vector<1x128xf32>
      tpu.vector_store %arg4[%c0_10, %c0_11], %17 {strides = array<i32>} : memref<1x128xf32, #tpu.memory_space<vmem>>, vector<1x128xf32>,
      %cst_12 = arith.constant 0.000000e+00 : f32
      %19 = vector.broadcast %cst_12 : f32 to vector<1x128xf32>
      %c0_13 = arith.constant 0 : index
      %c0_14 = arith.constant 0 : index
      %20 = vector.load %arg5[%c0_13, %c0_14] : memref<1x128xf32, #tpu.memory_space<vmem>>, vector<1x128xf32>
      tpu.vector_store %arg5[%c0_13, %c0_14], %19 {strides = array<i32>} : memref<1x128xf32, #tpu.memory_space<vmem>>, vector<1x128xf32>,
      %cst_15 = arith.constant 0.000000e+00 : f32
      %21 = vector.broadcast %cst_15 : f32 to vector<1x128xf32>
      %c0_16 = arith.constant 0 : index
      %c0_17 = arith.constant 0 : index
      %22 = vector.load %arg6[%c0_16, %c0_17] : memref<1x128xf32, #tpu.memory_space<vmem>>, vector<1x128xf32>
      tpu.vector_store %arg6[%c0_16, %c0_17], %21 {strides = array<i32>} : memref<1x128xf32, #tpu.memory_space<vmem>>, vector<1x128xf32>,
    } else {
    }
    %c0 = arith.constant 0 : index
    %c0_1 = arith.constant 0 : index
    %3 = vector.load %arg1[%c0, %c0_1] : memref<3x128xf32, #tpu.memory_space<vmem>>, vector<3x128xf32>
    %c0_2 = arith.constant 0 : index
    %c0_3 = arith.constant 0 : index
    %4 = vector.load %arg2[%c0_2, %c0_3] : memref<3x128xf32, #tpu.memory_space<vmem>>, vector<3x128xf32>
    %cst = arith.constant 0.000000e+00 : f32
    %5 = vector.broadcast %cst : f32 to vector<3x128xf32>
    %6 = arith.subf %5, %3 : vector<3x128xf32>
    %7 = math.exp %6 : vector<3x128xf32>
    %cst_4 = arith.constant 1.000000e+00 : f32
    %8 = vector.broadcast %cst_4 : f32 to vector<3x128xf32>
    %9 = arith.addf %8, %7 : vector<3x128xf32>
    %10 = tpu.reciprocal %9 {approx = true} : vector<3x128xf32> -> vector<3x128xf32>
    %c0_i32_5 = arith.constant 0 : i32
    %11 = arith.cmpi ne, %arg0, %c0_i32_5 : i32
    %12 = arith.extui %11 : i1 to i32
    %c0_i32_6 = arith.constant 0 : i32
    %13 = arith.cmpi ne, %12, %c0_i32_6 : i32
    scf.if %13 {
      %c0_9 = arith.constant 0 : index
      %c0_10 = arith.constant 0 : index
      %17 = vector.load %arg4[%c0_9, %c0_10] : memref<1x128xf32, #tpu.memory_space<vmem>>, vector<1x128xf32>
      %cst_11 = arith.constant dense<0.000000e+00> : vector<128xf32>
      %18 = vector.multi_reduction <add>, %10, %cst_11 [0] : vector<3x128xf32> to vector<128xf32>
      %19 = vector.shape_cast %18 : vector<128xf32> to vector<1x128xf32>
      %20 = arith.addf %17, %19 : vector<1x128xf32>
      %c0_12 = arith.constant 0 : index
      %c0_13 = arith.constant 0 : index
      %21 = vector.load %arg4[%c0_12, %c0_13] : memref<1x128xf32, #tpu.memory_space<vmem>>, vector<1x128xf32>
      tpu.vector_store %arg4[%c0_12, %c0_13], %20 {strides = array<i32>} : memref<1x128xf32, #tpu.memory_space<vmem>>, vector<1x128xf32>,
      %c0_14 = arith.constant 0 : index
      %c0_15 = arith.constant 0 : index
      %22 = vector.load %arg5[%c0_14, %c0_15] : memref<1x128xf32, #tpu.memory_space<vmem>>, vector<1x128xf32>
      %23 = arith.mulf %10, %4 : vector<3x128xf32>
      %cst_16 = arith.constant dense<0.000000e+00> : vector<128xf32>
      %24 = vector.multi_reduction <add>, %23, %cst_16 [0] : vector<3x128xf32> to vector<128xf32>
      %25 = vector.shape_cast %24 : vector<128xf32> to vector<1x128xf32>
      %26 = arith.addf %22, %25 : vector<1x128xf32>
      %c0_17 = arith.constant 0 : index
      %c0_18 = arith.constant 0 : index
      %27 = vector.load %arg5[%c0_17, %c0_18] : memref<1x128xf32, #tpu.memory_space<vmem>>, vector<1x128xf32>
      tpu.vector_store %arg5[%c0_17, %c0_18], %26 {strides = array<i32>} : memref<1x128xf32, #tpu.memory_space<vmem>>, vector<1x128xf32>,
      %c0_19 = arith.constant 0 : index
      %c0_20 = arith.constant 0 : index
      %28 = vector.load %arg6[%c0_19, %c0_20] : memref<1x128xf32, #tpu.memory_space<vmem>>, vector<1x128xf32>
      %cst_21 = arith.constant dense<0.000000e+00> : vector<128xf32>
      %29 = vector.multi_reduction <add>, %4, %cst_21 [0] : vector<3x128xf32> to vector<128xf32>
      %30 = vector.shape_cast %29 : vector<128xf32> to vector<1x128xf32>
      %31 = arith.addf %28, %30 : vector<1x128xf32>
      %c0_22 = arith.constant 0 : index
      %c0_23 = arith.constant 0 : index
      %32 = vector.load %arg6[%c0_22, %c0_23] : memref<1x128xf32, #tpu.memory_space<vmem>>, vector<1x128xf32>
      tpu.vector_store %arg6[%c0_22, %c0_23], %31 {strides = array<i32>} : memref<1x128xf32, #tpu.memory_space<vmem>>, vector<1x128xf32>,
    } else {
    }
    %c0_i32_7 = arith.constant 0 : i32
    %14 = arith.cmpi eq, %arg0, %c0_i32_7 : i32
    %15 = arith.extui %14 : i1 to i32
    %c0_i32_8 = arith.constant 0 : i32
    %16 = arith.cmpi ne, %15, %c0_i32_8 : i32
    scf.if %16 {
      %17 = tpu.iota {dimensions = array<i32: 0>} : vector<3x128xi32>
      %18 = tpu.iota {dimensions = array<i32: 1>} : vector<3x128xi32>
      %c128_i32 = arith.constant 128 : i32
      %19 = vector.broadcast %c128_i32 : i32 to vector<3x128xi32>
      %20 = arith.muli %17, %19 : vector<3x128xi32>
      %21 = arith.addi %20, %18 : vector<3x128xi32>
      %c300_i32 = arith.constant 300 : i32
      %22 = vector.broadcast %c300_i32 : i32 to vector<3x128xi32>
      %23 = arith.cmpi slt, %21, %22 : vector<3x128xi32>
      %cst_9 = arith.constant 0.000000e+00 : f32
      %24 = vector.broadcast %cst_9 : f32 to vector<3x128xf32>
      %25 = arith.select %23, %10, %24 : vector<3x128xi1>, vector<3x128xf32>
      %cst_10 = arith.constant 0.000000e+00 : f32
      %26 = vector.broadcast %cst_10 : f32 to vector<3x128xf32>
      %27 = arith.select %23, %4, %26 : vector<3x128xi1>, vector<3x128xf32>
      %c0_11 = arith.constant 0 : index
      %c0_12 = arith.constant 0 : index
      %28 = vector.load %arg4[%c0_11, %c0_12] : memref<1x128xf32, #tpu.memory_space<vmem>>, vector<1x128xf32>
      %29 = vector.shape_cast %28 : vector<1x128xf32> to vector<1x1x128xf32>
      %cst_13 = arith.constant dense<0.000000e+00> : vector<1xf32>
      %30 = vector.multi_reduction <add>, %29, %cst_13 [1, 2] : vector<1x1x128xf32> to vector<1xf32>
      %31 = vector.shape_cast %30 : vector<1xf32> to vector<1x1x1xf32>
      %32 = vector.extract %31[0, 0, 0] : f32 from vector<1x1x1xf32>
      %33 = vector.shape_cast %25 : vector<3x128xf32> to vector<1x3x128xf32>
      %cst_14 = arith.constant dense<0.000000e+00> : vector<1xf32>
      %34 = vector.multi_reduction <add>, %33, %cst_14 [1, 2] : vector<1x3x128xf32> to vector<1xf32>
      %35 = vector.shape_cast %34 : vector<1xf32> to vector<1x1x1xf32>
      %36 = vector.extract %35[0, 0, 0] : f32 from vector<1x1x1xf32>
      %37 = arith.addf %32, %36 : f32
      %c0_15 = arith.constant 0 : index
      %c0_16 = arith.constant 0 : index
      %38 = vector.load %arg5[%c0_15, %c0_16] : memref<1x128xf32, #tpu.memory_space<vmem>>, vector<1x128xf32>
      %39 = vector.shape_cast %38 : vector<1x128xf32> to vector<1x1x128xf32>
      %cst_17 = arith.constant dense<0.000000e+00> : vector<1xf32>
      %40 = vector.multi_reduction <add>, %39, %cst_17 [1, 2] : vector<1x1x128xf32> to vector<1xf32>
      %41 = vector.shape_cast %40 : vector<1xf32> to vector<1x1x1xf32>
      %42 = vector.extract %41[0, 0, 0] : f32 from vector<1x1x1xf32>
      %43 = arith.mulf %25, %27 : vector<3x128xf32>
      %44 = vector.shape_cast %43 : vector<3x128xf32> to vector<1x3x128xf32>
      %cst_18 = arith.constant dense<0.000000e+00> : vector<1xf32>
      %45 = vector.multi_reduction <add>, %44, %cst_18 [1, 2] : vector<1x3x128xf32> to vector<1xf32>
      %46 = vector.shape_cast %45 : vector<1xf32> to vector<1x1x1xf32>
      %47 = vector.extract %46[0, 0, 0] : f32 from vector<1x1x1xf32>
      %48 = arith.addf %42, %47 : f32
      %c0_19 = arith.constant 0 : index
      %c0_20 = arith.constant 0 : index
      %49 = vector.load %arg6[%c0_19, %c0_20] : memref<1x128xf32, #tpu.memory_space<vmem>>, vector<1x128xf32>
      %50 = vector.shape_cast %49 : vector<1x128xf32> to vector<1x1x128xf32>
      %cst_21 = arith.constant dense<0.000000e+00> : vector<1xf32>
      %51 = vector.multi_reduction <add>, %50, %cst_21 [1, 2] : vector<1x1x128xf32> to vector<1xf32>
      %52 = vector.shape_cast %51 : vector<1xf32> to vector<1x1x1xf32>
      %53 = vector.extract %52[0, 0, 0] : f32 from vector<1x1x1xf32>
      %54 = vector.shape_cast %27 : vector<3x128xf32> to vector<1x3x128xf32>
      %cst_22 = arith.constant dense<0.000000e+00> : vector<1xf32>
      %55 = vector.multi_reduction <add>, %54, %cst_22 [1, 2] : vector<1x3x128xf32> to vector<1xf32>
      %56 = vector.shape_cast %55 : vector<1xf32> to vector<1x1x1xf32>
      %57 = vector.extract %56[0, 0, 0] : f32 from vector<1x1x1xf32>
      %58 = arith.addf %53, %57 : f32
      %59 = arith.subf %37, %48 : f32
      %cst_23 = arith.constant 3.000000e+02 : f32
      %60 = arith.subf %cst_23, %58 : f32
      %61 = arith.divf %59, %60 : f32
      %62 = arith.divf %48, %58 : f32
      %cst_24 = arith.constant 3.000000e+02 : f32
      %63 = arith.divf %37, %cst_24 : f32
      %cst_25 = arith.constant 1.000000e+00 : f32
      %64 = arith.mulf %cst_25, %61 : f32
      %cst_26 = arith.constant 0.000000e+00 : f32
      %65 = arith.addf %cst_26, %64 : f32
      %cst_27 = arith.constant 0.000000e+00 : f32
      %66 = arith.mulf %cst_27, %62 : f32
      %67 = arith.addf %65, %66 : f32
      %cst_28 = arith.constant -1.000000e+00 : f32
      %68 = arith.mulf %cst_28, %63 : f32
      %69 = arith.addf %67, %68 : f32
      %cst_29 = arith.constant 0.000000e+00 : f32
      %70 = arith.maximumf %69, %cst_29 : f32
      %71 = arith.mulf %70, %70 : f32
      %cst_30 = arith.constant 0.000000e+00 : f32
      %72 = arith.addf %cst_30, %71 : f32
      %cst_31 = arith.constant -1.000000e+00 : f32
      %73 = arith.mulf %cst_31, %61 : f32
      %cst_32 = arith.constant 0.000000e+00 : f32
      %74 = arith.addf %cst_32, %73 : f32
      %cst_33 = arith.constant 0.000000e+00 : f32
      %75 = arith.mulf %cst_33, %62 : f32
      %76 = arith.addf %74, %75 : f32
      %cst_34 = arith.constant 1.000000e+00 : f32
      %77 = arith.mulf %cst_34, %63 : f32
      %78 = arith.addf %76, %77 : f32
      %cst_35 = arith.constant 0.000000e+00 : f32
      %79 = arith.maximumf %78, %cst_35 : f32
      %80 = arith.mulf %79, %79 : f32
      %81 = arith.addf %72, %80 : f32
      %cst_36 = arith.constant 1.000000e+00 : f32
      %82 = arith.mulf %cst_36, %61 : f32
      %cst_37 = arith.constant 0.000000e+00 : f32
      %83 = arith.addf %cst_37, %82 : f32
      %cst_38 = arith.constant 0.000000e+00 : f32
      %84 = arith.mulf %cst_38, %62 : f32
      %85 = arith.addf %83, %84 : f32
      %cst_39 = arith.constant -1.000000e+00 : f32
      %86 = arith.mulf %cst_39, %63 : f32
      %87 = arith.addf %85, %86 : f32
      %cst_40 = arith.constant 0.000000e+00 : f32
      %88 = arith.maximumf %87, %cst_40 : f32
      %89 = arith.mulf %88, %88 : f32
      %90 = arith.addf %81, %89 : f32
      %cst_41 = arith.constant -1.000000e+00 : f32
      %91 = arith.mulf %cst_41, %61 : f32
      %cst_42 = arith.constant 0.000000e+00 : f32
      %92 = arith.addf %cst_42, %91 : f32
      %cst_43 = arith.constant 0.000000e+00 : f32
      %93 = arith.mulf %cst_43, %62 : f32
      %94 = arith.addf %92, %93 : f32
      %cst_44 = arith.constant 1.000000e+00 : f32
      %95 = arith.mulf %cst_44, %63 : f32
      %96 = arith.addf %94, %95 : f32
      %cst_45 = arith.constant 0.000000e+00 : f32
      %97 = arith.maximumf %96, %cst_45 : f32
      %98 = arith.mulf %97, %97 : f32
      %99 = arith.addf %90, %98 : f32
      %cst_46 = arith.constant 2.500000e-01 : f32
      %100 = arith.mulf %cst_46, %99 : f32
      %c0_47 = arith.constant 0 : index
      %c0_48 = arith.constant 0 : index
      %101 = memref.load %arg3[%c0_47, %c0_48] : memref<1x1xf32, #tpu.memory_space<smem>>
      memref.store %100, %arg3[%c0_47, %c0_48] : memref<1x1xf32, #tpu.memory_space<smem>>
    } else {
    }
    return
  }
  func.func @transform_0(%arg0: i32) -> (i32, i32) {
    %c0_i32 = arith.constant 0 : i32
    %c0_i32_0 = arith.constant 0 : i32
    return %arg0, %c0_i32 : i32, i32
  }
  func.func @transform_1(%arg0: i32) -> (i32, i32) {
    %c0_i32 = arith.constant 0 : i32
    %c0_i32_0 = arith.constant 0 : i32
    return %arg0, %c0_i32 : i32, i32
  }
  func.func @transform_2(%arg0: i32) -> (i32, i32) {
    %c0_i32 = arith.constant 0 : i32
    %c0_i32_0 = arith.constant 0 : i32
    %c0_i32_1 = arith.constant 0 : i32
    return %c0_i32, %c0_i32_0 : i32, i32
  }
}

</mosaic_0001>

<bundles_post_ra>
// kernel: demographic_parity_loss.1
= control target key start
LH: loop header
LB: loop body
LE: loop exit
PB: predicated region body
PF: predicated region fallthrough
CT: control target
= control target key end

     0   :  { %v228_v1 = vmov 0.0   ;;  %s271_s0 = inlined_call_operand.vmem [shape: f32[3,128], index: 0, kind: input, shape index: {}]   ;;  %s272_s1 = inlined_call_operand.vmem [shape: f32[3,128], index: 1, kind: input, shape index: {}]   ;;  %s273_s2 = inlined_call_operand.hbm [shape: f32[1,1], index: 2, kind: output, shape index: {}]  }
   0x1   :  { %v19_v0 = vld [vmem:[%s271_s0] sm:$0x7]  ;;  %17 = vst [vmem:[#allocation3] sm:$0x1] %v228_v1  ;;  %16 = vst [vmem:[#allocation2] sm:$0x1] %v228_v1 }
   0x2   :  { %18 = vst [vmem:[#allocation4] sm:$0x1] %v228_v1  ;;  %v21_v2 = vsub.f32 0.0, %v19_v0 }
   0x3   :  { %7 = vsyncpa [#allocation6], 0  ;;  %vm75_vm0 = vcmask 1040384   ;;  %v65_v6 = vlaneseq  ;;  %v20_v15 = vld [vmem:[%s272_s1] sm:$0x7]  ;;  %vm86_vm2 = vcmask 1042432  }
   0x4   :  { %v22_v3 = vmul.f32 1.442695, %v21_v2  ;;  %s229_s6 = smov 0.0  }
   0x5   :  { %v66_v9 = vshrl.u32 %v65_v6, 7  ;;  %v68_v12 = vand.u32 127, %v65_v6 }
   0x6   :  { %208 = vpow2.f32 %v22_v3 }
   0x7   :  { %v69_v13 = vmul.u32 128, %v66_v9 }
   0x8   :  { %v98_v4 = vld [vmem:[#allocation3] sm:$0x1]  ;;  %v74_v5 = vld [vmem:[#allocation2] sm:$0x1] }
   0x9   :  { %v99_v7 = vsel %vm75_vm0, %v98_v4, 0.0  ;;  %v76_v8 = vsel %vm75_vm0, %v74_v5, 0.0  ;;  %v70_v14 = vadd.s32 %v69_v13, %v68_v12  ;;  %v121_v19 = vld [vmem:[#allocation4] sm:$0x1] }
   0xa   :  { %100 = vadd.xlane.f32.xlu1 %v99_v7  ;;  %77 = vadd.xlane.f32.xlu0 %v76_v8  ;;  %v122_v23 = vsel %vm75_vm0, %v121_v19, 0.0 }
   0xb   :  { %vm71_vm1 = vcmp.lt.s32.totalorder %v70_v14, 300 }
   0xc   :  { %v73_v16 = vsel %vm71_vm1, %v20_v15, 0.0 }
   0xd   :  { %v132_v24 = vsel %vm86_vm2, %v73_v16, 0.0 }
  0x10   :  { %v209_v10 = vpop.eup %208 }
  0x11   :  { %v24_v11 = vadd.f32 1.0, %v209_v10 }
  0x13   :  { %210 = vrcp.f32 %v24_v11 }
  0x1d   :  { %v211_v17 = vpop.eup %210 }
  0x1e   :  { %v72_v18 = vsel %vm71_vm1, %v211_v17, 0.0 }
  0x1f   :  { %v87_v20 = vsel %vm86_vm2, %v72_v18, 0.0  ;;  %v109_v21 = vmul.f32 %v73_v16, %v72_v18 }
  0x20   :  { %88 = vadd.xlane.f32.xlu0 %v87_v20 }
  0x21   :  { %v110_v22 = vsel %vm86_vm2, %v109_v21, 0.0 }
  0x22   :  { %111 = vadd.xlane.f32.xlu1 %v110_v22 }
  0x24   :  { %123 = vadd.xlane.f32.xlu0 %v122_v23 }
  0x26   :  { %133 = vadd.xlane.f32.xlu1 %v132_v24 }
  0x97   :  { %v78_v25 = vpop.xlane.xlu0 %77  ;;  %v101_v31 = vpop.xlane.xlu1 %100 }
  0x98   :  { %v79_v26 = vrot.slane %v78_v25, 4  ;;  %v102_v33 = vrot.slane %v101_v31, 4 }
  0x9a   :  { %v80_v27 = vadd.f32 %v79_v26, %v78_v25  ;;  %v103_v34 = vadd.f32 %v102_v33, %v101_v31 }
  0x9c   :  { %v81_v28 = vrot.slane %v80_v27, 2  ;;  %v104_v35 = vrot.slane %v103_v34, 2 }
  0x9e   :  { %v82_v29 = vadd.f32 %v81_v28, %v80_v27  ;;  %v105_v42 = vadd.f32 %v104_v35, %v103_v34 }
  0xa0   :  { %v83_v30 = vrot.slane %v82_v29, 1  ;;  %v106_v51 = vrot.slane %v105_v42, 1 }
  0xa2   :  { %v84_v32 = vadd.f32 %v83_v30, %v82_v29  ;;  %v107_v60 = vadd.f32 %v106_v51, %v105_v42 }
  0xa4   :  { %189 = vpush %v84_v32 }
  0xad   :  { %v89_v36 = vpop.xlane.xlu0 %88 }
  0xae   :  { %v90_v37 = vrot.slane %v89_v36, 4 }
  0xaf   :  { %v112_v38 = vpop.xlane.xlu1 %111 }
  0xb0   :  { %v91_v39 = vadd.f32 %v90_v37, %v89_v36  ;;  %v113_v40 = vrot.slane %v112_v38, 4 }
  0xb1   :  { %v124_v41 = vpop.xlane.xlu0 %123 }
  0xb2   :  { %v92_v43 = vrot.slane %v91_v39, 2  ;;  %v114_v44 = vadd.f32 %v113_v40, %v112_v38  ;;  %v125_v45 = vrot.slane %v124_v41, 4 }
  0xb3   :  { %v134_v46 = vpop.xlane.xlu1 %133 }
  0xb4   :  { %v115_v47 = vrot.slane %v114_v44, 2  ;;  %v126_v48 = vadd.f32 %v125_v45, %v124_v41  ;;  %v135_v49 = vrot.slane %v134_v46, 4  ;;  %v93_v50 = vadd.f32 %v92_v43, %v91_v39 }
  0xb6   :  { %v127_v52 = vrot.slane %v126_v48, 2  ;;  %v136_v53 = vadd.f32 %v135_v49, %v134_v46  ;;  %v94_v54 = vrot.slane %v93_v50, 1  ;;  %v116_v55 = vadd.f32 %v115_v47, %v114_v44 }
  0xb8   :  { %v128_v56 = vadd.f32 %v127_v52, %v126_v48  ;;  %v137_v57 = vrot.slane %v136_v53, 2  ;;  %v95_v58 = vadd.f32 %v94_v54, %v93_v50  ;;  %v117_v59 = vrot.slane %v116_v55, 1 }
  0xba   :  { %v138_v61 = vadd.f32 %v137_v57, %v136_v53  ;;  %191 = vpush %v95_v58  ;;  %v118_v62 = vadd.f32 %v117_v59, %v116_v55  ;;  %v129_v63 = vrot.slane %v128_v56, 1 }
  0xbb   :  { %193 = vpush %v107_v60 }
  0xbc   :  { %195 = vpush %v118_v62  ;;  %v130_v0 = vadd.f32 %v129_v63, %v128_v56  ;;  %v139_v1 = vrot.slane %v138_v61, 1 }
  0xbe   :  { %197 = vpush %v130_v0  ;;  %v140_v2 = vadd.f32 %v139_v1, %v138_v61 }
  0xc0   :  { %199 = vpush %v140_v2 }
  0xd5   :  { %s190_s1 = spop %189 }
  0xeb   :  { %s192_s12 = spop %191 }
  0xec   :  { %s255_s13 = sadd.f32 %s192_s12, %s190_s1  ;;  %s194_s14 = spop %193 }
  0xed   :  { %s196_s15 = spop %195 }
  0xee   :  { %s120_s16 = sadd.f32 %s196_s15, %s194_s14  ;;  %s155_s22 = smul.f32 0.0033333334, %s255_s13 }
  0xef   :  { %s198_s17 = spop %197  ;;  %s216_s15 = scalar_lea.hbm %s273_s2, 16 }
  0xf0   :  { %s143_s18 = ssub.f32 %s255_s13, %s120_s16  ;;  %s159_s29 = smul.f32 -1.0, %s155_s22 }
  0xf1   :  { %s200_s19 = spop %199  ;;  %p217_p0 = scmp.ne.s32.totalorder %s273_s2, %s216_s15 }
  0xf2   :  { %s142_s20 = sadd.f32 %s200_s19, %s198_s17  ;;  %p220_p1 = scmp.lt.u32.totalorder %s216_s15, %s273_s2 }
  0xf4   :  { %s144_s21 = ssub.f32 300.0, %s142_s20  ;;  %v149_v3 = vstv %s142_s20  ;;  %p222_p2 = pnand %p220_p1, %p217_p0 }
  0xf6   :  { %v145_v4 = vstv %s144_s21 }
  0xf7   :  { %212 = vrcp.f32 %v145_v4 }
  0xf8   :  { %214 = vrcp.f32 %v149_v3 }
 0x101   :  { %v213_v5 = vpop.eup %212 }
 0x102   :  { %v215_v6 = vpop.eup %214  ;;  %201 = vpush %v213_v5 }
 0x103   :  { %203 = vpush %v215_v6 }
 0x133   :  { %s202_s23 = spop %201 }
 0x134   :  { %s148_s24 = smul.f32 %s202_s23, %s143_s18  ;;  %s204_s25 = spop %203 }
 0x135   :  { %s152_s26 = smul.f32 %s204_s25, %s120_s16 }
 0x136   :  { %s164_s27 = smul.f32 -1.0, %s148_s24 }
 0x137   :  { %s157_s28 = smul.f32 0.0, %s152_s26 }
 0x139   :  { %s158_s30 = sadd.f32 %s157_s28, %s148_s24 }
 0x13a   :  { %s166_s3 = sadd.f32 %s164_s27, %s157_s28 }
 0x13b   :  { %s160_s4 = sadd.f32 %s159_s29, %s158_s30 }
 0x13c   :  { %s167_s5 = sadd.f32 %s166_s3, %s155_s22 }
 0x13d   :  { %s161_s7 = smax.f32 %s229_s6, %s160_s4 }
 0x13e   :  { %s162_s8 = smul.f32 %s161_s7, %s161_s7  ;;  %s168_s9 = smax.f32 %s229_s6, %s167_s5 }
 0x13f   :  { %s169_s10 = smul.f32 %s168_s9, %s168_s9 }
 0x141   :  { %s170_s0 = sadd.f32 %s169_s10, %s162_s8 }
 0x143   :  { %s171_s11 = sadd.f32 %s170_s0, %s162_s8 }
 0x145   :  { %s172_s1 = sadd.f32 %s171_s11, %s169_s10 }
 0x147   :  { %s173_s12 = smul.f32 0.25, %s172_s1 }
 0x149   :  { %175 = sst [smem:[#allocation5]] %s173_s12 }
 0x14a   :  { %225 = shalt.err (!%p222_p2)
}
 0x14b   :  { %s230_s20 = smov [#allocation5]  }
 0x14c   :  { %183 = dma.smem_to_hbm %s230_s20, 16, %s273_s2, [#allocation6]  }
 0x14d   :  { %226 = dma.done.wait [#allocation6], 16  }
 0x14e   :  { %227 = vsyncadd [#allocation6], 4294967280 }
 0x14f   :  { %187 = sfence }
 0x150   :  { %188 = vsyncpa [#allocation6], 1 }

</bundles_post_ra>
